<compile_context>
chip_gen: v7x
topology: tpu7x:2x2x1
jax: 0.10.0
libtpu: 0.0.40
codegen_flags: <defaults>
</compile_context>

<pallas_src>
import math

import numpy as np
import jax
import jax.numpy as jnp
from jax.experimental import pallas as pl
from jax.experimental.pallas import tpu as pltpu


def _round_up(v, m):
    return (v + m - 1) // m * m


def _lcm(a, b):
    return a * b // math.gcd(a, b)


def _roi_point_pool_kernel(roi_ref, roi_lane_ref, coord_ref, pfhi_ref, pflo_ref,
                           out_ref):
    """One grid step = one tile of Mt rois of one batch element.

    roi_ref      : VMEM (1, Mt, 9)      [cx, cy, cz, dx, dy, dz, ry, cos, sin]
    roi_lane_ref : VMEM (1, 9, Mt*S)    same params, repeated S times along lanes
    coord_ref    : VMEM (1, 3, N)       point coordinates, points on the lane axis
    pfhi_ref     : VMEM (1, D+1, N)     bf16 hi half of [xyz, feats, ones]
    pflo_ref     : VMEM (1, D+1, N)     bf16 lo half (f32 residual) of the same
    out_ref      : VMEM (1, D, Mt*S)    pooled + canonicalized roi features
    """
    _, D, MtS = out_ref.shape
    Mt = roi_ref.shape[1]
    S = MtS // Mt
    N = coord_ref.shape[2]

    roi = roi_ref[0]                                   # (Mt, 9)
    cx, cy, cz = roi[:, 0:1], roi[:, 1:2], roi[:, 2:3]
    dx, dy, dz = roi[:, 3:4], roi[:, 4:5], roi[:, 5:6]
    cosr, sinr = roi[:, 7:8], roi[:, 8:9]

    xyz = coord_ref[0]                                 # (3, N)
    x, y, z = xyz[0:1, :], xyz[1:2, :], xyz[2:3, :]

    # ---- point-in-rotated-box test, all Mt rois x N points in one vectorized pass ----
    half_x, half_y, half_z = dx * 0.5, dy * 0.5, dz * 0.5
    cz_c = cz + half_z                                 # box z is given at the bottom face
    sx = x - cx                                        # (Mt, N)
    sy = y - cy
    lx = sx * cosr + sy * sinr                         # rotate offsets by -ry into box frame
    ly = sy * cosr - sx * sinr
    in_box = ((jnp.abs(z - cz_c) <= half_z)
              & (lx > -half_x) & (lx < half_x)
              & (ly > -half_y) & (ly < half_y))        # (Mt, N)
    mask_f = in_box.astype(jnp.float32)

    # ---- ordered rank of in-box points: log2(N) Hillis-Steele scan with pltpu.roll
    # (replaces the former resident (N, N) triangular matmul: zero VMEM, XLU work) --
    lane = jax.lax.broadcasted_iota(jnp.int32, (Mt, N), 1)
    cum = mask_f
    shift = 1
    while shift < N:                                   # static unroll, ceil(log2(N)) steps
        rolled = pltpu.roll(cum, shift=shift, axis=1)  # rolled[i] = cum[i - shift]
        cum = cum + jnp.where(lane >= shift, rolled, 0.0)
        shift *= 2
    rank = cum.astype(jnp.int32) - 1                   # (Mt, N), exact integers in f32

    total = jnp.sum(mask_f, axis=-1, keepdims=True)    # (Mt, 1) #in-box points
    cnt = jnp.maximum(jnp.minimum(total, float(S)), 1.0)

    # target rank per sampled slot: s if s < cnt else s % cnt (wrap-around duplication);
    # f32 floor-division of small exact integers is exact for realistic S.
    s_f = jax.lax.broadcasted_iota(jnp.int32, (Mt, S), 1).astype(jnp.float32)
    wrapped = s_f - jnp.floor(s_f / cnt) * cnt
    tgt = (jnp.where(s_f < cnt, s_f, wrapped) + 0.5).astype(jnp.int32)   # (Mt, S)

    # ---- one-hot ordered gather as lane-dense (D+1, N) @ (N, Mt*S) MXU matmuls.
    # sel is exactly 0/1 so bf16 operands lose nothing on it; the point features
    # arrive pre-split into bf16 hi/lo halves -> two single-pass bf16 matmuls with
    # f32 accumulation instead of the multi-pass f32 MXU path.
    sel = (rank[:, None, :] == tgt[:, :, None]) & in_box[:, None, :]     # (Mt, S, N)
    sel_f = sel.astype(jnp.float32).reshape(Mt * S, N)
    sel_t = jnp.transpose(sel_f).astype(jnp.bfloat16)                    # (N, Mt*S)
    pooled = jnp.dot(pfhi_ref[0], sel_t, preferred_element_type=jnp.float32)
    pooled = pooled + jnp.dot(pflo_ref[0], sel_t,
                              preferred_element_type=jnp.float32)        # (D+1, Mt*S)
    # rows 0..2 = xyz, rows 3..D-1 = feats, row D = non-empty flag (gathered ones).

    # ---- canonicalize: subtract roi center, rotate xyz by -ry about z.  Per-column
    # roi params come lane-expanded from the wrapper; results go out as row slices. ----
    rl = roi_lane_ref[0]                               # (9, Mt*S)
    gx = pooled[0:1, :] - rl[0:1, :]
    gy = pooled[1:2, :] - rl[1:2, :]
    gz = pooled[2:3, :] - rl[2:3, :]
    cl, sl = rl[7:8, :], rl[8:9, :]
    nx = gx * cl + gy * sl
    ny = gy * cl - gx * sl
    flag = pooled[D:D + 1, :]                          # 1.0 non-empty / 0.0 empty roi

    # empty rois -> all zeros (feature rows are already exactly zero when empty,
    # since their one-hot rows are all zero); lane-dense full-width stores.
    out_ref[:, 0:1, :] = (nx * flag)[None].astype(out_ref.dtype)
    out_ref[:, 1:2, :] = (ny * flag)[None].astype(out_ref.dtype)
    out_ref[:, 2:3, :] = (gz * flag)[None].astype(out_ref.dtype)
    if D > 3:
        out_ref[:, 3:, :] = pooled[3:D, :][None].astype(out_ref.dtype)


def single_3d_roi_point_extract(feats, coordinate, batch_inds, rois,
                                num_sampled_points=16, roi_tile=64):
    """JAX/Pallas equivalent of Single3DRoIPointExtractor.forward with
    roi_layer = RoIPointPool3d(num_sampled_points=num_sampled_points).

    feats:      (B, N, C) float32 point-wise features
    coordinate: (B, N, 3) float32 point coordinates
    batch_inds: int batch size (used exactly as in the PyTorch module's .view)
    rois:       (B*M, 8) float32 [batch_idx, cx, cy, cz, dx, dy, dz, ry]
    returns:    (B*M, S, 3+C) float32 pooled features
    """
    B = int(batch_inds)
    rois3d = rois[..., 1:].reshape(B, -1, rois.shape[-1] - 1)            # (B, M, 7)
    M = rois3d.shape[1]
    N = coordinate.shape[1]
    C = feats.shape[-1]
    D = 3 + C
    S = int(num_sampled_points)

    # roi tile: multiple of 8 (sublanes) with Mt*S a multiple of 128 (lane-dense
    # output slab); capped near M so tiny problems don't over-pad.
    base = _lcm(8, 128 // math.gcd(S, 128))
    Mt = max(base, min(_round_up(int(roi_tile), base), _round_up(M, base)))
    M_pad = _round_up(M, Mt)
    T = M_pad // Mt
    G = B * T
    MtS = Mt * S

    # pad points to a lane multiple; sentinel coordinates land outside every box.
    Np = _round_up(N, 128)
    coord_f = coordinate.astype(jnp.float32)
    feats_f = feats.astype(jnp.float32)
    if Np != N:
        coord_f = jnp.pad(coord_f, ((0, 0), (0, Np - N), (0, 0)),
                          constant_values=1e9)
        feats_f = jnp.pad(feats_f, ((0, 0), (0, Np - N), (0, 0)))

    # per-roi parameters [cx, cy, cz, dx, dy, dz, ry, cos(ry), sin(ry)];
    # padded rois are all-zero boxes -> empty -> zero output (sliced off below).
    ry = rois3d[..., 6:7]
    roi_params = jnp.concatenate([rois3d, jnp.cos(ry), jnp.sin(ry)],
                                 axis=-1).astype(jnp.float32)            # (B, M, 9)
    roi_tab = jnp.zeros((B, M_pad, 9), jnp.float32).at[:, :M, :].set(roi_params)
    roi_tiles = roi_tab.reshape(G, Mt, 9)                                # (G, Mt, 9)
    # lane-expanded copy for the canonicalization (one column per roi*S + slot)
    roi_lane = jnp.repeat(jnp.transpose(roi_tiles, (0, 2, 1)), S, axis=2)  # (G, 9, MtS)

    coord_t = jnp.transpose(coord_f, (0, 2, 1))                          # (B, 3, Np)
    # [xyz, feats, ones]: the gathered ones-row is the per-column non-empty flag.
    pf_t = jnp.concatenate(
        [coord_t, jnp.transpose(feats_f, (0, 2, 1)),
         jnp.ones((B, 1, Np), jnp.float32)], axis=1)                     # (B, D+1, Np)
    # bf16 hi/lo split so the gather runs as two single-pass bf16 MXU matmuls.
    pf_hi = pf_t.astype(jnp.bfloat16)
    pf_lo = (pf_t - pf_hi.astype(jnp.float32)).astype(jnp.bfloat16)

    # generation-aware VMEM limit (128 MiB physical on v5e/v6e, 64 MiB on v7x).
    try:
        cap = int(pltpu.get_tpu_info().vmem_capacity_bytes)
    except Exception:
        cap = 64 << 20
    bf16, f32 = 2, 4
    need = 2 * (Mt * 128 * f32                         # roi tile block
                + 16 * MtS * f32                       # lane-expanded roi params
                + 8 * Np * f32                         # coords
                + 2 * _round_up(D + 1, 8) * Np * bf16  # pf hi + lo
                + 8 * MtS * f32)                       # output slab
    vmem_limit = int(max(32 << 20,
                         min(min(100 << 20, cap - (12 << 20)),
                             need + (16 << 20))))

    tile_map = lambda i: (i, 0, 0)
    batch_map = tile_map if T == 1 else (lambda i: (i // T, 0, 0))

    out = pl.pallas_call(
        _roi_point_pool_kernel,
        out_shape=jax.ShapeDtypeStruct((G, D, MtS), jnp.float32),
        grid_spec=pltpu.PrefetchScalarGridSpec(
            num_scalar_prefetch=0,
            grid=(G,),
            in_specs=[
                pl.BlockSpec((1, Mt, 9), tile_map),        # roi params (per tile)
                pl.BlockSpec((1, 9, MtS), tile_map),       # roi params, lane-expanded
                pl.BlockSpec((1, 3, Np), batch_map),       # coordinates (per batch)
                pl.BlockSpec((1, D + 1, Np), batch_map),   # point features, bf16 hi
                pl.BlockSpec((1, D + 1, Np), batch_map),   # point features, bf16 lo
            ],
            out_specs=pl.BlockSpec((1, D, MtS), tile_map),
        ),
        compiler_params=pltpu.CompilerParams(
            dimension_semantics=("parallel",),
            vmem_limit_bytes=vmem_limit),
    )(roi_tiles, roi_lane, coord_t, pf_hi, pf_lo)

    # un-tile the lane-dense (D, Mt*S) slabs back to (B*M, S, D) with a cheap
    # wrapper-side transpose (XLA), keeping the kernel's stores lane-dense.
    out = out.reshape(B, T, D, Mt, S)
    out = jnp.transpose(out, (0, 1, 3, 4, 2)).reshape(B, M_pad, S, D)
    return out[:, :M].reshape(B * M, S, D)


def _reference_numpy(roi_tab, coordinate, feats, S):
    """Loop-based reference mirroring the CUDA RoIPointPool3d + module post-processing."""
    roi_tab = np.asarray(roi_tab, dtype=np.float32)
    coordinate = np.asarray(coordinate, dtype=np.float32)
    feats = np.asarray(feats, dtype=np.float32)
    B, M, _ = roi_tab.shape
    N = coordinate.shape[1]
    D = 3 + feats.shape[2]
    out = np.zeros((B * M, S, D), dtype=np.float32)
    for b in range(B):
        pf = np.concatenate([coordinate[b], feats[b]], axis=-1)          # (N, D)
        for m in range(M):
            cx, cy, cz, dx, dy, dz, _ry, cosr, sinr = roi_tab[b, m]
            czc = cz + dz * np.float32(0.5)
            idxs = []
            for n in range(N):
                x, y, z = coordinate[b, n]
                if abs(z - czc) > dz * np.float32(0.5):
                    continue
                sx = x - cx
                sy = y - cy
                lx = sx * cosr + sy * sinr
                ly = -sx * sinr + sy * cosr
                if (-dx * 0.5 < lx < dx * 0.5) and (-dy * 0.5 < ly < dy * 0.5):
                    idxs.append(n)
                if len(idxs) >= S:
                    break
            r = b * M + m
            if not idxs:
                continue                                                 # empty roi stays zero
            cnt = len(idxs)
            full = [idxs[k] if k < cnt else idxs[k % cnt] for k in range(S)]
            pooled = pf[np.array(full)]                                  # (S, D)
            px = pooled[:, 0] - cx
            py = pooled[:, 1] - cy
            pz = pooled[:, 2] - cz
            out[r, :, 0] = px * cosr + py * sinr
            out[r, :, 1] = -px * sinr + py * cosr
            out[r, :, 2] = pz
            out[r, :, 3:] = pooled[:, 3:]
    return out


if __name__ == "__main__":
    B, N, C, M, S = 2, 256, 4, 3, 16

    key = jax.random.PRNGKey(0)
    k1, k2, k3, k4, k5 = jax.random.split(key, 5)
    coordinate = jax.random.uniform(k1, (B, N, 3), jnp.float32, minval=-4.0, maxval=4.0)
    feats = jax.random.normal(k2, (B, N, C), dtype=jnp.float32)

    centers = jax.random.uniform(k3, (B * M, 3), jnp.float32, minval=-2.0, maxval=2.0)
    sizes = jax.random.uniform(k4, (B * M, 3), jnp.float32, minval=1.5, maxval=4.0)
    yaw = jax.random.uniform(k5, (B * M, 1), jnp.float32, minval=-3.1, maxval=3.1)
    batch_col = jnp.repeat(jnp.arange(B, dtype=jnp.float32), M)[:, None]
    rois = jnp.concatenate([batch_col, centers, sizes, yaw], axis=-1)    # (B*M, 8)
    # force one roi to be empty to exercise the empty-flag path
    rois = rois.at[1, 1:4].set(jnp.array([50.0, 50.0, 50.0], jnp.float32))

    pooled = single_3d_roi_point_extract(feats, coordinate, B, rois,
                                         num_sampled_points=S)
    pooled = jax.block_until_ready(pooled)
    assert pooled.shape == (B * M, S, 3 + C)

    # reference check (use the same cos/sin values the kernel saw)
    rois3d = rois[..., 1:].reshape(B, M, 7)
    ry = rois3d[..., 6:7]
    roi_tab = jnp.concatenate([rois3d, jnp.cos(ry), jnp.sin(ry)], axis=-1)
    ref = _reference_numpy(roi_tab, coordinate, feats, S)
    np.testing.assert_allclose(np.asarray(pooled), ref, rtol=1e-3, atol=1e-3)

    print("KERNEL_OK")
</pallas_src>

<mosaic_0001>
module attributes {stable_mosaic.version = 11 : i64} {
  func.func @_roi_point_pool_kernel(%arg0: i32, %arg1: memref<1x8x9xf32, #tpu.memory_space<vmem>>, %arg2: memref<1x9x128xf32, #tpu.memory_space<vmem>>, %arg3: memref<1x3x256xf32, #tpu.memory_space<vmem>>, %arg4: memref<1x8x256xbf16, #tpu.memory_space<vmem>>, %arg5: memref<1x8x256xbf16, #tpu.memory_space<vmem>>, %arg6: memref<1x7x128xf32, #tpu.memory_space<vmem>>) attributes {dimension_semantics = [#tpu.dimension_semantics<parallel>], iteration_bounds = array<i64: 2>, scalar_prefetch = 0 : i64, scratch_operands = 0 : i64, tpu.core_type = #tpu.core_type<tc>, window_params = [{transform_indices = @transform_0, window_bounds = array<i64: 1, 8, 9>}, {transform_indices = @transform_1, window_bounds = array<i64: 1, 9, 128>}, {transform_indices = @transform_2, window_bounds = array<i64: 1, 3, 256>}, {transform_indices = @transform_3, window_bounds = array<i64: 1, 8, 256>}, {transform_indices = @transform_4, window_bounds = array<i64: 1, 8, 256>}, {transform_indices = @transform_5, window_bounds = array<i64: 1, 7, 128>}]} {
    %c0 = arith.constant 0 : index
    %c0_0 = arith.constant 0 : index
    %c0_1 = arith.constant 0 : index
    %0 = vector.load %arg1[%c0, %c0_0, %c0_1] : memref<1x8x9xf32, #tpu.memory_space<vmem>>, vector<1x8x9xf32>
    %1 = vector.shape_cast %0 : vector<1x8x9xf32> to vector<8x9xf32>
    %2 = vector.extract_strided_slice %1 {offsets = [0, 0], sizes = [8, 1], strides = [1, 1]} : vector<8x9xf32> to vector<8x1xf32>
    %3 = vector.extract_strided_slice %1 {offsets = [0, 1], sizes = [8, 1], strides = [1, 1]} : vector<8x9xf32> to vector<8x1xf32>
    %4 = vector.extract_strided_slice %1 {offsets = [0, 2], sizes = [8, 1], strides = [1, 1]} : vector<8x9xf32> to vector<8x1xf32>
    %5 = vector.extract_strided_slice %1 {offsets = [0, 3], sizes = [8, 1], strides = [1, 1]} : vector<8x9xf32> to vector<8x1xf32>
    %6 = vector.extract_strided_slice %1 {offsets = [0, 4], sizes = [8, 1], strides = [1, 1]} : vector<8x9xf32> to vector<8x1xf32>
    %7 = vector.extract_strided_slice %1 {offsets = [0, 5], sizes = [8, 1], strides = [1, 1]} : vector<8x9xf32> to vector<8x1xf32>
    %8 = vector.extract_strided_slice %1 {offsets = [0, 7], sizes = [8, 1], strides = [1, 1]} : vector<8x9xf32> to vector<8x1xf32>
    %9 = vector.extract_strided_slice %1 {offsets = [0, 8], sizes = [8, 1], strides = [1, 1]} : vector<8x9xf32> to vector<8x1xf32>
    %c0_2 = arith.constant 0 : index
    %c0_3 = arith.constant 0 : index
    %c0_4 = arith.constant 0 : index
    %10 = vector.load %arg3[%c0_2, %c0_3, %c0_4] : memref<1x3x256xf32, #tpu.memory_space<vmem>>, vector<1x3x256xf32>
    %11 = vector.shape_cast %10 : vector<1x3x256xf32> to vector<3x256xf32>
    %12 = vector.extract_strided_slice %11 {offsets = [0, 0], sizes = [1, 256], strides = [1, 1]} : vector<3x256xf32> to vector<1x256xf32>
    %13 = vector.extract_strided_slice %11 {offsets = [1, 0], sizes = [1, 256], strides = [1, 1]} : vector<3x256xf32> to vector<1x256xf32>
    %14 = vector.extract_strided_slice %11 {offsets = [2, 0], sizes = [1, 256], strides = [1, 1]} : vector<3x256xf32> to vector<1x256xf32>
    %cst = arith.constant 5.000000e-01 : f32
    %15 = vector.broadcast %cst : f32 to vector<8x1xf32>
    %16 = arith.mulf %5, %15 : vector<8x1xf32>
    %cst_5 = arith.constant 5.000000e-01 : f32
    %17 = vector.broadcast %cst_5 : f32 to vector<8x1xf32>
    %18 = arith.mulf %6, %17 : vector<8x1xf32>
    %cst_6 = arith.constant 5.000000e-01 : f32
    %19 = vector.broadcast %cst_6 : f32 to vector<8x1xf32>
    %20 = arith.mulf %7, %19 : vector<8x1xf32>
    %21 = arith.addf %4, %20 : vector<8x1xf32>
    %22 = vector.broadcast %12 : vector<1x256xf32> to vector<8x256xf32>
    %23 = vector.broadcast %2 : vector<8x1xf32> to vector<8x256xf32>
    %24 = arith.subf %22, %23 : vector<8x256xf32>
    %25 = vector.broadcast %13 : vector<1x256xf32> to vector<8x256xf32>
    %26 = vector.broadcast %3 : vector<8x1xf32> to vector<8x256xf32>
    %27 = arith.subf %25, %26 : vector<8x256xf32>
    %28 = vector.broadcast %8 : vector<8x1xf32> to vector<8x256xf32>
    %29 = arith.mulf %24, %28 : vector<8x256xf32>
    %30 = vector.broadcast %9 : vector<8x1xf32> to vector<8x256xf32>
    %31 = arith.mulf %27, %30 : vector<8x256xf32>
    %32 = arith.addf %29, %31 : vector<8x256xf32>
    %33 = vector.broadcast %8 : vector<8x1xf32> to vector<8x256xf32>
    %34 = arith.mulf %27, %33 : vector<8x256xf32>
    %35 = vector.broadcast %9 : vector<8x1xf32> to vector<8x256xf32>
    %36 = arith.mulf %24, %35 : vector<8x256xf32>
    %37 = arith.subf %34, %36 : vector<8x256xf32>
    %38 = vector.broadcast %14 : vector<1x256xf32> to vector<8x256xf32>
    %39 = vector.broadcast %21 : vector<8x1xf32> to vector<8x256xf32>
    %40 = arith.subf %38, %39 : vector<8x256xf32>
    %41 = math.absf %40 : vector<8x256xf32>
    %42 = vector.broadcast %20 : vector<8x1xf32> to vector<8x256xf32>
    %43 = arith.cmpf ole, %41, %42 : vector<8x256xf32>
    %cst_7 = arith.constant 0.000000e+00 : f32
    %44 = vector.broadcast %cst_7 : f32 to vector<8x1xf32>
    %45 = arith.subf %44, %16 : vector<8x1xf32>
    %46 = vector.broadcast %45 : vector<8x1xf32> to vector<8x256xf32>
    %47 = arith.cmpf ogt, %32, %46 : vector<8x256xf32>
    %48 = arith.andi %43, %47 : vector<8x256xi1>
    %49 = vector.broadcast %16 : vector<8x1xf32> to vector<8x256xf32>
    %50 = arith.cmpf olt, %32, %49 : vector<8x256xf32>
    %51 = arith.andi %48, %50 : vector<8x256xi1>
    %cst_8 = arith.constant 0.000000e+00 : f32
    %52 = vector.broadcast %cst_8 : f32 to vector<8x1xf32>
    %53 = arith.subf %52, %18 : vector<8x1xf32>
    %54 = vector.broadcast %53 : vector<8x1xf32> to vector<8x256xf32>
    %55 = arith.cmpf ogt, %37, %54 : vector<8x256xf32>
    %56 = arith.andi %51, %55 : vector<8x256xi1>
    %57 = vector.broadcast %18 : vector<8x1xf32> to vector<8x256xf32>
    %58 = arith.cmpf olt, %37, %57 : vector<8x256xf32>
    %59 = arith.andi %56, %58 : vector<8x256xi1>
    %60 = arith.extui %59 : vector<8x256xi1> to vector<8x256xi32>
    %61 = arith.sitofp %60 : vector<8x256xi32> to vector<8x256xf32>
    %62 = tpu.iota {dimensions = array<i32: 1>} : vector<8x256xi32>
    %c1_i32 = arith.constant 1 : i32
    %63 = tpu.dynamic_rotate %61 by %c1_i32 dim 1 : vector<8x256xf32>, i32 -> vector<8x256xf32>
    %c1_i32_9 = arith.constant 1 : i32
    %64 = vector.broadcast %c1_i32_9 : i32 to vector<8x256xi32>
    %65 = arith.cmpi sge, %62, %64 : vector<8x256xi32>
    %cst_10 = arith.constant 0.000000e+00 : f32
    %66 = vector.broadcast %cst_10 : f32 to vector<8x256xf32>
    %67 = arith.select %65, %63, %66 : vector<8x256xi1>, vector<8x256xf32>
    %68 = arith.addf %61, %67 : vector<8x256xf32>
    %c2_i32 = arith.constant 2 : i32
    %69 = tpu.dynamic_rotate %68 by %c2_i32 dim 1 : vector<8x256xf32>, i32 -> vector<8x256xf32>
    %c2_i32_11 = arith.constant 2 : i32
    %70 = vector.broadcast %c2_i32_11 : i32 to vector<8x256xi32>
    %71 = arith.cmpi sge, %62, %70 : vector<8x256xi32>
    %cst_12 = arith.constant 0.000000e+00 : f32
    %72 = vector.broadcast %cst_12 : f32 to vector<8x256xf32>
    %73 = arith.select %71, %69, %72 : vector<8x256xi1>, vector<8x256xf32>
    %74 = arith.addf %68, %73 : vector<8x256xf32>
    %c4_i32 = arith.constant 4 : i32
    %75 = tpu.dynamic_rotate %74 by %c4_i32 dim 1 : vector<8x256xf32>, i32 -> vector<8x256xf32>
    %c4_i32_13 = arith.constant 4 : i32
    %76 = vector.broadcast %c4_i32_13 : i32 to vector<8x256xi32>
    %77 = arith.cmpi sge, %62, %76 : vector<8x256xi32>
    %cst_14 = arith.constant 0.000000e+00 : f32
    %78 = vector.broadcast %cst_14 : f32 to vector<8x256xf32>
    %79 = arith.select %77, %75, %78 : vector<8x256xi1>, vector<8x256xf32>
    %80 = arith.addf %74, %79 : vector<8x256xf32>
    %c8_i32 = arith.constant 8 : i32
    %81 = tpu.dynamic_rotate %80 by %c8_i32 dim 1 : vector<8x256xf32>, i32 -> vector<8x256xf32>
    %c8_i32_15 = arith.constant 8 : i32
    %82 = vector.broadcast %c8_i32_15 : i32 to vector<8x256xi32>
    %83 = arith.cmpi sge, %62, %82 : vector<8x256xi32>
    %cst_16 = arith.constant 0.000000e+00 : f32
    %84 = vector.broadcast %cst_16 : f32 to vector<8x256xf32>
    %85 = arith.select %83, %81, %84 : vector<8x256xi1>, vector<8x256xf32>
    %86 = arith.addf %80, %85 : vector<8x256xf32>
    %c16_i32 = arith.constant 16 : i32
    %87 = tpu.dynamic_rotate %86 by %c16_i32 dim 1 : vector<8x256xf32>, i32 -> vector<8x256xf32>
    %c16_i32_17 = arith.constant 16 : i32
    %88 = vector.broadcast %c16_i32_17 : i32 to vector<8x256xi32>
    %89 = arith.cmpi sge, %62, %88 : vector<8x256xi32>
    %cst_18 = arith.constant 0.000000e+00 : f32
    %90 = vector.broadcast %cst_18 : f32 to vector<8x256xf32>
    %91 = arith.select %89, %87, %90 : vector<8x256xi1>, vector<8x256xf32>
    %92 = arith.addf %86, %91 : vector<8x256xf32>
    %c32_i32 = arith.constant 32 : i32
    %93 = tpu.dynamic_rotate %92 by %c32_i32 dim 1 : vector<8x256xf32>, i32 -> vector<8x256xf32>
    %c32_i32_19 = arith.constant 32 : i32
    %94 = vector.broadcast %c32_i32_19 : i32 to vector<8x256xi32>
    %95 = arith.cmpi sge, %62, %94 : vector<8x256xi32>
    %cst_20 = arith.constant 0.000000e+00 : f32
    %96 = vector.broadcast %cst_20 : f32 to vector<8x256xf32>
    %97 = arith.select %95, %93, %96 : vector<8x256xi1>, vector<8x256xf32>
    %98 = arith.addf %92, %97 : vector<8x256xf32>
    %c64_i32 = arith.constant 64 : i32
    %99 = tpu.dynamic_rotate %98 by %c64_i32 dim 1 : vector<8x256xf32>, i32 -> vector<8x256xf32>
    %c64_i32_21 = arith.constant 64 : i32
    %100 = vector.broadcast %c64_i32_21 : i32 to vector<8x256xi32>
    %101 = arith.cmpi sge, %62, %100 : vector<8x256xi32>
    %cst_22 = arith.constant 0.000000e+00 : f32
    %102 = vector.broadcast %cst_22 : f32 to vector<8x256xf32>
    %103 = arith.select %101, %99, %102 : vector<8x256xi1>, vector<8x256xf32>
    %104 = arith.addf %98, %103 : vector<8x256xf32>
    %c128_i32 = arith.constant 128 : i32
    %105 = tpu.dynamic_rotate %104 by %c128_i32 dim 1 : vector<8x256xf32>, i32 -> vector<8x256xf32>
    %c128_i32_23 = arith.constant 128 : i32
    %106 = vector.broadcast %c128_i32_23 : i32 to vector<8x256xi32>
    %107 = arith.cmpi sge, %62, %106 : vector<8x256xi32>
    %cst_24 = arith.constant 0.000000e+00 : f32
    %108 = vector.broadcast %cst_24 : f32 to vector<8x256xf32>
    %109 = arith.select %107, %105, %108 : vector<8x256xi1>, vector<8x256xf32>
    %110 = arith.addf %104, %109 : vector<8x256xf32>
    %111 = arith.fptosi %110 : vector<8x256xf32> to vector<8x256xi32>
    %c1_i32_25 = arith.constant 1 : i32
    %112 = vector.broadcast %c1_i32_25 : i32 to vector<8x256xi32>
    %113 = arith.subi %111, %112 : vector<8x256xi32>
    %cst_26 = arith.constant dense<0.000000e+00> : vector<8xf32>
    %114 = vector.multi_reduction <add>, %61, %cst_26 [1] : vector<8x256xf32> to vector<8xf32>
    %115 = vector.shape_cast %114 : vector<8xf32> to vector<8x1xf32>
    %cst_27 = arith.constant 1.600000e+01 : f32
    %116 = vector.broadcast %cst_27 : f32 to vector<8x1xf32>
    %117 = arith.minimumf %115, %116 : vector<8x1xf32>
    %cst_28 = arith.constant 1.000000e+00 : f32
    %118 = vector.broadcast %cst_28 : f32 to vector<8x1xf32>
    %119 = arith.maximumf %117, %118 : vector<8x1xf32>
    %120 = tpu.iota {dimensions = array<i32: 1>} : vector<8x16xi32>
    %121 = arith.sitofp %120 : vector<8x16xi32> to vector<8x16xf32>
    %122 = vector.broadcast %119 : vector<8x1xf32> to vector<8x16xf32>
    %123 = arith.divf %121, %122 : vector<8x16xf32>
    %124 = math.floor %123 : vector<8x16xf32>
    %125 = vector.broadcast %119 : vector<8x1xf32> to vector<8x16xf32>
    %126 = arith.mulf %124, %125 : vector<8x16xf32>
    %127 = arith.subf %121, %126 : vector<8x16xf32>
    %128 = vector.broadcast %119 : vector<8x1xf32> to vector<8x16xf32>
    %129 = arith.cmpf olt, %121, %128 : vector<8x16xf32>
    %130 = arith.select %129, %121, %127 : vector<8x16xi1>, vector<8x16xf32>
    %cst_29 = arith.constant 5.000000e-01 : f32
    %131 = vector.broadcast %cst_29 : f32 to vector<8x16xf32>
    %132 = arith.addf %130, %131 : vector<8x16xf32>
    %133 = arith.fptosi %132 : vector<8x16xf32> to vector<8x16xi32>
    %134 = vector.shape_cast %113 : vector<8x256xi32> to vector<8x1x256xi32>
    %135 = vector.shape_cast %133 : vector<8x16xi32> to vector<8x16x1xi32>
    %136 = vector.broadcast %134 : vector<8x1x256xi32> to vector<8x16x256xi32>
    %137 = vector.broadcast %135 : vector<8x16x1xi32> to vector<8x16x256xi32>
    %138 = arith.cmpi eq, %136, %137 : vector<8x16x256xi32>
    %139 = vector.shape_cast %59 : vector<8x256xi1> to vector<8x1x256xi1>
    %140 = vector.broadcast %139 : vector<8x1x256xi1> to vector<8x16x256xi1>
    %141 = arith.andi %138, %140 : vector<8x16x256xi1>
    %142 = arith.extui %141 : vector<8x16x256xi1> to vector<8x16x256xi32>
    %143 = arith.sitofp %142 : vector<8x16x256xi32> to vector<8x16x256xf32>
    %144 = vector.shape_cast %143 : vector<8x16x256xf32> to vector<128x256xf32>
    %145 = tpu.transpose %144, [1, 0] : vector<128x256xf32> -> vector<256x128xf32>
    %146 = arith.truncf %145 : vector<256x128xf32> to vector<256x128xbf16>
    %c0_30 = arith.constant 0 : index
    %c0_31 = arith.constant 0 : index
    %c0_32 = arith.constant 0 : index
    %147 = vector.load %arg4[%c0_30, %c0_31, %c0_32] : memref<1x8x256xbf16, #tpu.memory_space<vmem>>, vector<1x8x256xbf16>
    %148 = vector.shape_cast %147 : vector<1x8x256xbf16> to vector<8x256xbf16>
    %cst_33 = arith.constant dense<0.000000e+00> : vector<8x128xf32>
    %149 = tpu.matmul %148, %146, %cst_33 {dimension_numbers = #tpu.dot_dimension_numbers<[1], [0], [0], [1], [0, 0, 1, 1], [], []>} : vector<8x256xbf16>, vector<256x128xbf16>, vector<8x128xf32> -> vector<8x128xf32>
    %c0_34 = arith.constant 0 : index
    %c0_35 = arith.constant 0 : index
    %c0_36 = arith.constant 0 : index
    %150 = vector.load %arg5[%c0_34, %c0_35, %c0_36] : memref<1x8x256xbf16, #tpu.memory_space<vmem>>, vector<1x8x256xbf16>
    %151 = vector.shape_cast %150 : vector<1x8x256xbf16> to vector<8x256xbf16>
    %cst_37 = arith.constant dense<0.000000e+00> : vector<8x128xf32>
    %152 = tpu.matmul %151, %146, %cst_37 {dimension_numbers = #tpu.dot_dimension_numbers<[1], [0], [0], [1], [0, 0, 1, 1], [], []>} : vector<8x256xbf16>, vector<256x128xbf16>, vector<8x128xf32> -> vector<8x128xf32>
    %153 = arith.addf %149, %152 : vector<8x128xf32>
    %c0_38 = arith.constant 0 : index
    %c0_39 = arith.constant 0 : index
    %c0_40 = arith.constant 0 : index
    %154 = vector.load %arg2[%c0_38, %c0_39, %c0_40] : memref<1x9x128xf32, #tpu.memory_space<vmem>>, vector<1x9x128xf32>
    %155 = vector.shape_cast %154 : vector<1x9x128xf32> to vector<9x128xf32>
    %156 = vector.extract_strided_slice %153 {offsets = [0, 0], sizes = [1, 128], strides = [1, 1]} : vector<8x128xf32> to vector<1x128xf32>
    %157 = vector.extract_strided_slice %155 {offsets = [0, 0], sizes = [1, 128], strides = [1, 1]} : vector<9x128xf32> to vector<1x128xf32>
    %158 = arith.subf %156, %157 : vector<1x128xf32>
    %159 = vector.extract_strided_slice %153 {offsets = [1, 0], sizes = [1, 128], strides = [1, 1]} : vector<8x128xf32> to vector<1x128xf32>
    %160 = vector.extract_strided_slice %155 {offsets = [1, 0], sizes = [1, 128], strides = [1, 1]} : vector<9x128xf32> to vector<1x128xf32>
    %161 = arith.subf %159, %160 : vector<1x128xf32>
    %162 = vector.extract_strided_slice %153 {offsets = [2, 0], sizes = [1, 128], strides = [1, 1]} : vector<8x128xf32> to vector<1x128xf32>
    %163 = vector.extract_strided_slice %155 {offsets = [2, 0], sizes = [1, 128], strides = [1, 1]} : vector<9x128xf32> to vector<1x128xf32>
    %164 = arith.subf %162, %163 : vector<1x128xf32>
    %165 = vector.extract_strided_slice %155 {offsets = [7, 0], sizes = [1, 128], strides = [1, 1]} : vector<9x128xf32> to vector<1x128xf32>
    %166 = vector.extract_strided_slice %155 {offsets = [8, 0], sizes = [1, 128], strides = [1, 1]} : vector<9x128xf32> to vector<1x128xf32>
    %167 = arith.mulf %158, %165 : vector<1x128xf32>
    %168 = arith.mulf %161, %166 : vector<1x128xf32>
    %169 = arith.addf %167, %168 : vector<1x128xf32>
    %170 = arith.mulf %161, %165 : vector<1x128xf32>
    %171 = arith.mulf %158, %166 : vector<1x128xf32>
    %172 = arith.subf %170, %171 : vector<1x128xf32>
    %173 = vector.extract_strided_slice %153 {offsets = [7, 0], sizes = [1, 128], strides = [1, 1]} : vector<8x128xf32> to vector<1x128xf32>
    %174 = arith.mulf %169, %173 : vector<1x128xf32>
    %175 = vector.shape_cast %174 : vector<1x128xf32> to vector<1x1x128xf32>
    %c0_41 = arith.constant 0 : index
    %c0_42 = arith.constant 0 : index
    %c0_43 = arith.constant 0 : index
    %176 = vector.load %arg6[%c0_41, %c0_42, %c0_43] : memref<1x7x128xf32, #tpu.memory_space<vmem>>, vector<1x1x128xf32>
    tpu.vector_store %arg6[%c0_41, %c0_42, %c0_43], %175 {strides = array<i32>} : memref<1x7x128xf32, #tpu.memory_space<vmem>>, vector<1x1x128xf32>,
    %177 = arith.mulf %172, %173 : vector<1x128xf32>
    %178 = vector.shape_cast %177 : vector<1x128xf32> to vector<1x1x128xf32>
    %c0_44 = arith.constant 0 : index
    %c1 = arith.constant 1 : index
    %c0_45 = arith.constant 0 : index
    %179 = vector.load %arg6[%c0_44, %c1, %c0_45] : memref<1x7x128xf32, #tpu.memory_space<vmem>>, vector<1x1x128xf32>
    tpu.vector_store %arg6[%c0_44, %c1, %c0_45], %178 {strides = array<i32>} : memref<1x7x128xf32, #tpu.memory_space<vmem>>, vector<1x1x128xf32>,
    %180 = arith.mulf %164, %173 : vector<1x128xf32>
    %181 = vector.shape_cast %180 : vector<1x128xf32> to vector<1x1x128xf32>
    %c0_46 = arith.constant 0 : index
    %c2 = arith.constant 2 : index
    %c0_47 = arith.constant 0 : index
    %182 = vector.load %arg6[%c0_46, %c2, %c0_47] : memref<1x7x128xf32, #tpu.memory_space<vmem>>, vector<1x1x128xf32>
    tpu.vector_store %arg6[%c0_46, %c2, %c0_47], %181 {strides = array<i32>} : memref<1x7x128xf32, #tpu.memory_space<vmem>>, vector<1x1x128xf32>,
    %183 = vector.extract_strided_slice %153 {offsets = [3, 0], sizes = [4, 128], strides = [1, 1]} : vector<8x128xf32> to vector<4x128xf32>
    %184 = vector.shape_cast %183 : vector<4x128xf32> to vector<1x4x128xf32>
    %c0_48 = arith.constant 0 : index
    %c3 = arith.constant 3 : index
    %c0_49 = arith.constant 0 : index
    %185 = vector.load %arg6[%c0_48, %c3, %c0_49] : memref<1x7x128xf32, #tpu.memory_space<vmem>>, vector<1x4x128xf32>
    tpu.vector_store %arg6[%c0_48, %c3, %c0_49], %184 {strides = array<i32>} : memref<1x7x128xf32, #tpu.memory_space<vmem>>, vector<1x4x128xf32>,
    return
  }
  func.func @transform_0(%arg0: i32) -> (i32, i32, i32) {
    %c0_i32 = arith.constant 0 : i32
    %c0_i32_0 = arith.constant 0 : i32
    %c0_i32_1 = arith.constant 0 : i32
    return %arg0, %c0_i32, %c0_i32_0 : i32, i32, i32
  }
  func.func @transform_1(%arg0: i32) -> (i32, i32, i32) {
    %c0_i32 = arith.constant 0 : i32
    %c0_i32_0 = arith.constant 0 : i32
    %c0_i32_1 = arith.constant 0 : i32
    return %arg0, %c0_i32, %c0_i32_0 : i32, i32, i32
  }
  func.func @transform_2(%arg0: i32) -> (i32, i32, i32) {
    %c0_i32 = arith.constant 0 : i32
    %c0_i32_0 = arith.constant 0 : i32
    %c0_i32_1 = arith.constant 0 : i32
    return %arg0, %c0_i32, %c0_i32_0 : i32, i32, i32
  }
  func.func @transform_3(%arg0: i32) -> (i32, i32, i32) {
    %c0_i32 = arith.constant 0 : i32
    %c0_i32_0 = arith.constant 0 : i32
    %c0_i32_1 = arith.constant 0 : i32
    return %arg0, %c0_i32, %c0_i32_0 : i32, i32, i32
  }
  func.func @transform_4(%arg0: i32) -> (i32, i32, i32) {
    %c0_i32 = arith.constant 0 : i32
    %c0_i32_0 = arith.constant 0 : i32
    %c0_i32_1 = arith.constant 0 : i32
    return %arg0, %c0_i32, %c0_i32_0 : i32, i32, i32
  }
  func.func @transform_5(%arg0: i32) -> (i32, i32, i32) {
    %c0_i32 = arith.constant 0 : i32
    %c0_i32_0 = arith.constant 0 : i32
    %c0_i32_1 = arith.constant 0 : i32
    return %arg0, %c0_i32, %c0_i32_0 : i32, i32, i32
  }
}

</mosaic_0001>

<bundles_post_ra>
// kernel: tpu_custom_call.1
= control target key start
LH: loop header
LB: loop body
LE: loop exit
PB: predicated region body
PF: predicated region fallthrough
CT: control target
= control target key end

     0   :  { %s1685_s18 = smov 0   ;;  %s1992_s0 = inlined_call_operand.vmem [shape: f32[2,8,9], index: 0, kind: input, shape index: {}]   ;;  %s1993_s1 = inlined_call_operand.vmem [shape: f32[2,9,128], index: 1, kind: input, shape index: {}]   ;;  %s1994_s2 = inlined_call_operand.vmem [shape: f32[2,3,256], index: 2, kind: input, shape index: {}]   ;;  %s1995_s3 = inlined_call_operand.vmem [shape: bf16[2,8,256], index: 3, kind: input, shape index: {}]   ;;  %s1996_s4 = inlined_call_operand.vmem [shape: bf16[2,8,256], index: 4, kind: input, shape index: {}]   ;;  %s1997_s5 = inlined_call_operand.vmem [shape: f32[2,7,128], index: 5, kind: output, shape index: {}]  }
   0x1 LB: > { %s1359_s19 = sadd.s32 4294967295, %s1635_s18   ;;  %p1363_p0 = scmp.ge.s32.totalorder %s1635_s18, 1  ;;  %s1635_s18 = sphi %s1685_s18, %s15_s18  }
   0x2   : > { %p226_p1 = scmp.lt.s32.totalorder %s1635_s18, 3 }
   0x4   : > { %p227_p2 = pnand %p1363_p0, %p226_p1 }
   0x5   : > { %p272_p3 = scmp.lt.s32.totalorder (!%p227_p2), %s1359_s19, 1  ;;  %v1637_v0 = vmov (!%p227_p2), 1   ;;  %v1638_v1 = vmov (!%p227_p2), 0   ;;  %s1639_s24 = smov (!%p227_p2), 125   ;;  %v1640_v4 = vmov (!%p227_p2), 7   ;;  %v1641_v5 = vmov (!%p227_p2), 8  }
   0x6   : > { %230 = sbr.rel (%p227_p2) target bundleno = 1570 (0x622), region = 40  ;;  %1497 = vset.pattern.permute.xlu1 (!%p227_p2), %v1637_v0  ;;  %1496 = vset.pattern.permute.xlu0 (!%p227_p2), %v1638_v1  ;;  %v1642_v6 = vmov (!%p227_p2), 2   ;;  %v1643_v7 = vmov (!%p227_p2), 5   ;;  %v1644_v9 = vmov (!%p227_p2), 3   ;;  %v1645_v10 = vmov (!%p227_p2), 4   ;;  %s1647_s28 = smov (!%p227_p2), 1  }
   0x7   : > { %v310_v14 = vlaneseq (!%p227_p2)  ;;  %s1648_s29 = smov (!%p227_p2), 2   ;;  %s1649_s30 = smov (!%p227_p2), 4  }
   0x8   : > { %s1650_s6 = smov (!%p227_p2), 8   ;;  %s1651_s7 = smov (!%p227_p2), 16  }
   0x9   : > { %v1704_v15 = vshrl.u32 (!%p227_p2), %v310_v14, 7  ;;  %s1652_s8 = smov (!%p227_p2), 32   ;;  %s1653_s9 = smov (!%p227_p2), 64  }
   0xb   : > { %v1711_v17 = vsub.s32 (!%p227_p2), 0, %v1704_v15  ;;  %v1714_v18 = vsub.s32 (!%p227_p2), 1, %v1704_v15  ;;  %v341_v20 = vsub.s32 (!%p227_p2), 5, %v1704_v15  ;;  %v316_v21 = vsub.s32 (!%p227_p2), 4, %v1704_v15 }
   0xc   : > { %v1727_v29 = vsub.s32 (!%p227_p2), 2, %v1704_v15  ;;  %v385_v30 = vsub.s32 (!%p227_p2), 6, %v1704_v15 }
   0xd   : > { %s2017_s19 = smov (!%p272_p3, %s1359_s19), 1 }
   0xe   : > { %s1697_s20 = sshll.u32 %s2017_s19, 3  ;;  %s1416_s16 = sshll.u32 %s2017_s19, 4 }
   0xf   : > { %s275_s23 = scalar_lea.vmem %s1992_s0, %s1697_s20  ;;  %s285_s27 = scalar_lea.vmem %s1994_s2, %s1697_s20 }
  0x10   : > { %v301_v2 = vld [vmem:[%s275_s23] sm:$0xff]  ;;  %s295_s12 = scalar_lea.vmem %s1996_s4, %s1697_s20  ;;  %s290_s15 = scalar_lea.vmem %s1995_s3, %s1697_s20 }
  0x11   : > { %v303_v3 = vmul.f32 0.5, %v301_v2  ;;  %354 = vperm.xlu1 %1497, %v301_v2   ;;  %v302_v19 = vld [vmem:[%s285_s27] sm:$0x77]  ;;  %s280_s22 = scalar_lea.vmem %s1993_s1, %s1416_s16  ;;  %s299_s25 = scalar_lea.vmem %s1997_s5, %s1697_s20 }
  0x12   : > { %v338_v23 = vrot.slane %v302_v19, %v1714_v18  ;;  %v313_v24 = vrot.slane %v302_v19, %v1711_v17  ;;  %v342_v25 = vrot.slane %v302_v19, %v341_v20  ;;  %v317_v26 = vrot.slane %v302_v19, %v316_v21 }
  0x13   : > { %305 = vrot.lane.b32.xlu0 %v303_v3, %s1639_s24  ;;  %v412_v8 = vsub.f32 0.0, %v303_v3  ;;  %v382_v37 = vrot.slane %v302_v19, %v1727_v29  ;;  %v386_v38 = vrot.slane %v302_v19, %v385_v30 }
  0x14   : > { %v348_v27 = vrot.slane %v338_v23, %v1714_v18  ;;  %v323_v28 = vrot.slane %v313_v24, %v1711_v17  ;;  %v352_v31 = vrot.slane %v342_v25, %v1714_v18  ;;  %v327_v33 = vrot.slane %v317_v26, %v1711_v17 }
  0x15   : > { %1498 = vset.pattern.permute.xlu1 %v1640_v4  ;;  %v392_v43 = vrot.slane %v382_v37, %v1727_v29  ;;  %v396_v44 = vrot.slane %v386_v38, %v1727_v29 }
  0x16   : > { %360 = vperm.xlu1 %1498, %v301_v2  }
  0x17   : > { %330 = vperm.xlu0 %1496, %v301_v2  }
  0x1a   : > { %1499 = vset.pattern.permute.xlu1 %v1641_v5 }
  0x1b   : > { %366 = vperm.xlu1 %1499, %v301_v2   ;;  %1502 = vset.pattern.permute.xlu0 %v1642_v6 }
  0x1f   : > { %1500 = vset.pattern.permute.xlu1 %v1643_v7 }
  0x20   : > { %407 = vperm.xlu1 %1500, %v303_v3  }
  0x24   : > { %1501 = vset.pattern.permute.xlu1 %v1644_v9 }
  0x25   : > { %415 = vperm.xlu1 %1501, %v412_v8  }
  0x29   : > { %1504 = vset.pattern.permute.xlu1 %v1645_v10 }
  0x2a   : > { %431 = vperm.xlu1 %1504, %v412_v8  }
  0x2e   : > { %439 = vperm.xlu1 %1504, %v303_v3  }
  0x85   : > { %v306_v11 = vpop.permute.xlu0 %305 }
  0x86   : > { %v308_v12 = vadd.f32 %v306_v11, %v301_v2  ;;  %v1646_v2 = vmov 0.0  }
  0x88   : > { %399 = vperm.xlu0 %1502, %v308_v12  }
  0x8c   : > { %1503 = vset.pattern.permute.xlu0 %v1644_v9  ;;  %v1750_v9 = vand.u32 127, %v310_v14 }
  0x8d   : > { %423 = vperm.xlu0 %1503, %v303_v3  }
  0x90   : > { %v355_v13 = vpop.permute.xlu1 %354 }
  0x91   : > { %1622 = vset.pattern.permute.xlu0 %v1645_v10  ;;  %v357_v35 = vsub.f32 %v348_v27, %v355_v13  ;;  %v358_v39 = vsub.f32 %v352_v31, %v355_v13 }
  0x95   : > { %v361_v16 = vpop.permute.xlu1 %360 }
  0x96   : > { %v331_v34 = vpop.permute.xlu0 %330  ;;  %v373_v48 = vmul.f32 %v361_v16, %v357_v35  ;;  %v374_v55 = vmul.f32 %v361_v16, %v358_v39 }
  0x97   : > { %v333_v36 = vsub.f32 %v323_v28, %v331_v34  ;;  %v334_v40 = vsub.f32 %v327_v33, %v331_v34 }
  0x99   : > { %v363_v42 = vmul.f32 %v361_v16, %v333_v36  ;;  %v364_v46 = vmul.f32 %v361_v16, %v334_v40 }
  0x9a   : > { %v367_v22 = vpop.permute.xlu1 %366 }
  0x9b   : > { %v369_v45 = vmul.f32 %v367_v22, %v357_v35  ;;  %v370_v47 = vmul.f32 %v367_v22, %v358_v39  ;;  %v375_v50 = vmul.f32 %v367_v22, %v333_v36  ;;  %v376_v54 = vmul.f32 %v367_v22, %v334_v40 }
  0x9d   : > { %v371_v53 = vadd.f32 %v369_v45, %v363_v42  ;;  %v372_v57 = vadd.f32 %v370_v47, %v364_v46  ;;  %v377_v60 = vsub.f32 %v373_v48, %v375_v50  ;;  %v378_v62 = vsub.f32 %v374_v55, %v376_v54 }
  0x9f   : > { %v408_v32 = vpop.permute.xlu1 %407 }
  0xa4   : > { %v416_v41 = vpop.permute.xlu1 %415 }
  0xa5   : > { %vm418_vm2 = vcmp.gt.f32.partialorder %v371_v53, %v416_v41  ;;  %vm419_vm3 = vcmp.gt.f32.partialorder %v372_v57, %v416_v41 }
  0xa9   : > { %v432_v56 = vpop.permute.xlu1 %431 }
  0xaa   : > { %vm434_vm9 = vcmp.gt.f32.partialorder %v377_v60, %v432_v56  ;;  %vm435_vm11 = vcmp.gt.f32.partialorder %v378_v62, %v432_v56 }
  0xad   : > { %v440_v63 = vpop.permute.xlu1 %439 }
  0xae   : > { %vm442_vm13 = vcmp.lt.f32.partialorder %v377_v60, %v440_v63  ;;  %vm443_vm15 = vcmp.lt.f32.partialorder %v378_v62, %v440_v63 }
 0x107   : > { %v400_v49 = vpop.permute.xlu0 %399 }
 0x108   : > { %v402_v51 = vsub.f32 %v392_v43, %v400_v49  ;;  %v403_v52 = vsub.f32 %v396_v44, %v400_v49 }
 0x10a   : > { %v404_v58 = vand.u32 2147483647, %v402_v51  ;;  %v405_v59 = vand.u32 2147483647, %v403_v52 }
 0x10c   : > { %vm410_vm0 = vcmp.le.f32.partialorder %v404_v58, %v408_v32  ;;  %vm411_vm1 = vcmp.le.f32.partialorder %v405_v59, %v408_v32  ;;  %v424_v61 = vpop.permute.xlu0 %423 }
 0x10d   : > { %vm420_vm4 = vmand %vm410_vm0, %vm418_vm2  ;;  %vm426_vm5 = vcmp.lt.f32.partialorder %v371_v53, %v424_v61  ;;  %vm427_vm6 = vcmp.lt.f32.partialorder %v372_v57, %v424_v61  ;;  %v559_v57 = vcvt.s32.f32 %v1750_v9 }
 0x10e   : > { %vm421_vm7 = vmand %vm411_vm1, %vm419_vm3  ;;  %vm457_vm1 = vcmp.lt.s32.totalorder %v1750_v9, 1  ;;  %vm460_vm3 = vcmp.ge.s32.totalorder %v1750_v9, 1 }
 0x10f   : > { %vm428_vm8 = vmand %vm420_vm4, %vm426_vm5  ;;  %vm470_vm4 = vcmp.lt.s32.totalorder %v1750_v9, 2  ;;  %vm473_vm5 = vcmp.ge.s32.totalorder %v1750_v9, 2 }
 0x110   : > { %vm429_vm10 = vmand %vm421_vm7, %vm427_vm6  ;;  %vm483_vm6 = vcmp.lt.s32.totalorder %v1750_v9, 4  ;;  %vm486_vm7 = vcmp.ge.s32.totalorder %v1750_v9, 4 }
 0x111   : > { %vm436_vm12 = vmand %vm428_vm8, %vm434_vm9  ;;  %vm496_vm8 = vcmp.lt.s32.totalorder %v1750_v9, 8  ;;  %vm499_vm9 = vcmp.ge.s32.totalorder %v1750_v9, 8 }
 0x112   : > { %vm437_vm14 = vmand %vm429_vm10, %vm435_vm11  ;;  %vm509_vm10 = vcmp.lt.s32.totalorder %v1750_v9, 16  ;;  %vm512_vm11 = vcmp.ge.s32.totalorder %v1750_v9, 16 }
 0x113   : > { %vm444_vm0 = vmand %vm436_vm12, %vm442_vm13  ;;  %vm522_vm13 = vcmp.lt.s32.totalorder %v1750_v9, 32 }
 0x114   : > { %vm445_vm2 = vmand %vm437_vm14, %vm443_vm15  ;;  %v1738_v0 = vsel %vm444_vm0, 1, %v1638_v1  ;;  %v1374_v3 = vsel %vm444_vm0, 1.0, %v1646_v2  ;;  %vm525_vm14 = vcmp.ge.s32.totalorder %v1750_v9, 32  ;;  %vm535_vm15 = vcmp.lt.s32.totalorder %v1750_v9, 64 }
 0x115   : > { %v1742_v4 = vsel %vm445_vm2, 1, %v1638_v1  ;;  %v1375_v5 = vsel %vm445_vm2, 1.0, %v1646_v2  ;;  %vm538_vm0 = vcmp.ge.s32.totalorder %v1750_v9, 64 }
 0x116   : > { %v803_v6 = vcombine.low %v1738_v0, %v1742_v4  ;;  %v804_v7 = vcombine.high %v1738_v0, %v1742_v4  ;;  %v1505_v8 = vpack.i.bf16 %v1375_v5, %v1374_v3  ;;  %v554_v46 = vadd.f32 %v1375_v5, %v1374_v3 }
 0x118   : > { %1506 = vrot.lane.b32.xlu0 %v1505_v8, %s1647_s28 }
 0x18a   : > { %v1507_v10 = vpop.permute.xlu0 %1506 }
 0x18b   : > { %v1509_v11 = vunpack.i.h.bf16 %v1507_v10  ;;  %v1508_v12 = vunpack.i.l.bf16 %v1507_v10 }
 0x18d   : > { %v458_v13 = vsel %vm457_vm1, %v1508_v12, %v1509_v11  ;;  %v459_v16 = vsel %vm457_vm1, %v1509_v11, %v1508_v12 }
 0x18e   : > { %v465_v19 = vadd.f32 %v1375_v5, %v458_v13  ;;  %v462_v22 = vsel %vm460_vm3, %v459_v16, 0.0  ;;  %v698_v13 = vsub.s32 7, %v1704_v15 }
 0x18f   : > { %v464_v23 = vadd.f32 %v1374_v3, %v462_v22 }
 0x190   : > { %468 = vrot.lane.b32.xlu0 %v465_v19, %s1648_s29 }
 0x191   : > { %466 = vrot.lane.b32.xlu1 %v464_v23, %s1648_s29 }
 0x202   : > { %v469_v24 = vpop.permute.xlu0 %468 }
 0x203   : > { %v467_v14 = vpop.permute.xlu1 %466 }
 0x204   : > { %v471_v25 = vsel %vm470_vm4, %v467_v14, %v469_v24  ;;  %v472_v26 = vsel %vm470_vm4, %v469_v24, %v467_v14 }
 0x205   : > { %v475_v27 = vsel %vm473_vm5, %v472_v26, 0.0  ;;  %v478_v28 = vadd.f32 %v471_v25, %v465_v19  ;;  %v654_v26 = vsub.s32 3, %v1704_v15 }
 0x206   : > { %v477_v31 = vadd.f32 %v475_v27, %v464_v23 }
 0x207   : > { %481 = vrot.lane.b32.xlu0 %v478_v28, %s1649_s30 }
 0x208   : > { %479 = vrot.lane.b32.xlu1 %v477_v31, %s1649_s30 }
 0x279   : > { %v482_v32 = vpop.permute.xlu0 %481 }
 0x27a   : > { %v480_v33 = vpop.permute.xlu1 %479 }
 0x27b   : > { %v484_v34 = vsel %vm483_vm6, %v480_v33, %v482_v32  ;;  %v485_v35 = vsel %vm483_vm6, %v482_v32, %v480_v33 }
 0x27c   : > { %v488_v36 = vsel %vm486_vm7, %v485_v35, 0.0  ;;  %v491_v37 = vadd.f32 %v484_v34, %v478_v28 }
 0x27d   : > { %v490_v38 = vadd.f32 %v488_v36, %v477_v31  ;;  %v1654_v31 = vmov 1966171168  }
 0x27e   : > { %494 = vrot.lane.b32.xlu0 %v491_v37, %s1650_s6  ;;  %v572_v32 = vunpack.c.l.s4 %v1654_v31 }
 0x27f   : > { %492 = vrot.lane.b32.xlu1 %v490_v38, %s1650_s6 }
 0x280   : > { %v573_v33 = vunpack.c.0.s8 %v572_v32 }
 0x282   : > { %v1778_v35 = vsub.s32 %v573_v33, %v1704_v15 }
 0x2f0   : > { %v495_v39 = vpop.permute.xlu0 %494 }
 0x2f1   : > { %v493_v40 = vpop.permute.xlu1 %492 }
 0x2f2   : > { %v497_v41 = vsel %vm496_vm8, %v493_v40, %v495_v39  ;;  %v498_v42 = vsel %vm496_vm8, %v495_v39, %v493_v40  ;;  %v811_v40 = vrot.slane %v803_v6, %v1778_v35 }
 0x2f3   : > { %v501_v43 = vsel %vm499_vm9, %v498_v42, 0.0  ;;  %v504_v44 = vadd.f32 %v497_v41, %v491_v37 }
 0x2f4   : > { %v503_v45 = vadd.f32 %v501_v43, %v490_v38  ;;  %v827_v15 = vrot.slane %v811_v40, %v1778_v35 }
 0x2f5   : > { %507 = vrot.lane.b32.xlu0 %v504_v44, %s1651_s7 }
 0x2f6   : > { %505 = vrot.lane.b32.xlu1 %v503_v45, %s1651_s7  ;;  %vm853_vm2 = vcmp.ne.s32.totalorder %v827_v15, 0 }
 0x31a   : > { %555 = vadd.xlane.f32.xlu1 %v554_v46 }
 0x367   : > { %v508_v47 = vpop.permute.xlu0 %507 }
 0x368   : > { %v506_v48 = vpop.permute.xlu1 %505 }
 0x369   : > { %v511_v49 = vsel %vm509_vm10, %v508_v47, %v506_v48  ;;  %v510_v52 = vsel %vm509_vm10, %v506_v48, %v508_v47  ;;  %v819_v48 = vcombine.high %v811_v40, %v811_v40 }
 0x36a   : > { %v514_v50 = vsel %vm512_vm11, %v511_v49, 0.0  ;;  %v517_v53 = vadd.f32 %v510_v52, %v504_v44  ;;  %v861_v52 = vsel %vm853_vm2, 1, %v1638_v1 }
 0x36b   : > { %v516_v51 = vadd.f32 %v514_v50, %v503_v45  ;;  %v841_v6 = vrot.slane %v819_v48, %v1778_v35 }
 0x36d   : > { %518 = vrot.lane.b32.xlu0 %v516_v51, %s1652_s8  ;;  %vm854_vm1 = vcmp.ne.s32.totalorder %v841_v6, 0 }
 0x371   : > { %520 = vrot.lane.b32.xlu0 %v517_v53, %s1652_s8 }
 0x3a7   : > { %v556_v54 = vpop.xlane.xlu1 %555 }
 0x3a8   : > { %v557_v55 = vmin.f32 %v556_v54, 16.0 }
 0x3aa   : > { %v558_v56 = vmax.f32 %v557_v55, 1.0 }
 0x3ac   : > { %1627 = vrcp.f32 %v558_v56  ;;  %vm565_vm12 = vcmp.lt.f32.partialorder %v559_v57, %v558_v56 }
 0x3b6   : > { %v1628_v58 = vpop.eup %1627 }
 0x3b7   : > { %v561_v59 = vmul.f32 %v1628_v58, %v559_v57  ;;  %v876_v58 = vrot.slane %v861_v52, %v1714_v18 }
 0x3b9   : > { %v562_v60 = vfloor.f32 %v561_v59  ;;  %vm934_vm7 = vcmp.eq.s32.totalorder %v876_v58, 1 }
 0x3bb   : > { %v563_v61 = vmul.f32 %v562_v60, %v558_v56  ;;  %v872_v56 = vrot.slane %v861_v52, %v1711_v17 }
 0x3bd   : > { %v564_v62 = vsub.f32 %v559_v57, %v563_v61  ;;  %vm933_vm5 = vcmp.eq.s32.totalorder %v872_v56, 1 }
 0x3bf   : > { %v566_v63 = vsel %vm565_vm12, %v559_v57, %v564_v62  ;;  %v862_v62 = vsel %vm854_vm1, 1, %v1638_v1 }
 0x3c0   : > { %v567_v3 = vadd.f32 0.5, %v566_v63 }
 0x3c2   : > { %v1468_v5 = vtrunc.f32 %v567_v3  ;;  %v849_v3 = vcombine.high %v827_v15, %v827_v15 }
 0x3c4   : > { %v1469_v8 = vcvt.f32.s32 %v1468_v5 }
 0x3c6   : > { %v644_v10 = vrot.slane %v1469_v8, %v1727_v29  ;;  %v677_v11 = vrot.slane %v1469_v8, %v341_v20  ;;  %v688_v12 = vrot.slane %v1469_v8, %v385_v30  ;;  %v699_v16 = vrot.slane %v1469_v8, %v698_v13 }
 0x3c7   : > { %v622_v30 = vrot.slane %v1469_v8, %v1711_v17  ;;  %v633_v25 = vrot.slane %v1469_v8, %v1714_v18  ;;  %v655_v27 = vrot.slane %v1469_v8, %v654_v26  ;;  %v666_v28 = vrot.slane %v1469_v8, %v316_v21 }
 0x3c8   : > { %650 = vbcast.lane.b32.xlu1 %v644_v10, 264  ;;  %v884_v13 = vrot.slane %v862_v62, %v1714_v18 }
 0x3ca   : > { %vm1814_vm2 = vcmp.eq.s32.totalorder %v884_v13, 1 }
 0x3cc   : > { %679 = vbcast.lane.b32.xlu1 %v677_v11, 256 }
 0x3d0   : > { %690 = vbcast.lane.b32.xlu1 %v688_v12, 256 }
 0x3d4   : > { %701 = vbcast.lane.b32.xlu1 %v699_v16, 256 }
 0x3df   : > { %v519_v19 = vpop.permute.xlu0 %518 }
 0x3e3   : > { %v521_v22 = vpop.permute.xlu0 %520 }
 0x3e4   : > { %v524_v29 = vsel %vm522_vm13, %v521_v22, %v519_v19  ;;  %v523_v14 = vsel %vm522_vm13, %v519_v19, %v521_v22 }
 0x3e5   : > { %v527_v23 = vsel %vm525_vm14, %v524_v29, 0.0  ;;  %v530_v20 = vadd.f32 %v523_v14, %v517_v53  ;;  %vm855_vm14 = vcmp.ne.s32.totalorder %v849_v3, 0 }
 0x3e6   : > { %v529_v24 = vadd.f32 %v527_v23, %v516_v51 }
 0x3e8   : > { %531 = vrot.lane.b32.xlu0 %v529_v24, %s1653_s9 }
 0x3ec   : > { %533 = vrot.lane.b32.xlu0 %v530_v20, %s1653_s9 }
 0x3f0   : > { %624 = vbcast.lane.b32.xlu0 %v622_v30, 256 }
 0x3f4   : > { %628 = vbcast.lane.b32.xlu0 %v622_v30, 264 }
 0x3f8   : > { %635 = vbcast.lane.b32.xlu0 %v633_v25, 256 }
 0x3fc   : > { %639 = vbcast.lane.b32.xlu0 %v633_v25, 264  ;;  %v851_v25 = vcombine.high %v841_v6, %v841_v6 }
 0x400   : > { %646 = vbcast.lane.b32.xlu0 %v644_v10, 256  ;;  %v880_v10 = vrot.slane %v862_v62, %v1711_v17 }
 0x404   : > { %657 = vbcast.lane.b32.xlu0 %v655_v27, 256 }
 0x408   : > { %661 = vbcast.lane.b32.xlu0 %v655_v27, 264 }
 0x40c   : > { %668 = vbcast.lane.b32.xlu0 %v666_v28, 256 }
 0x410   : > { %672 = vbcast.lane.b32.xlu0 %v666_v28, 264 }
 0x414   : > { %683 = vbcast.lane.b32.xlu0 %v677_v11, 264 }
 0x418   : > { %694 = vbcast.lane.b32.xlu0 %v688_v12, 264 }
 0x41c   : > { %705 = vbcast.lane.b32.xlu0 %v699_v16, 264 }
 0x43a   : > { %v651_v40 = vpop.permute.xlu1 %650 }
 0x45a   : > { %v532_v34 = vpop.permute.xlu0 %531 }
 0x45e   : > { %v534_v36 = vpop.permute.xlu0 %533 }
 0x45f   : > { %v536_v37 = vsel %vm535_vm15, %v532_v34, %v534_v36  ;;  %v537_v38 = vsel %vm535_vm15, %v534_v36, %v532_v34  ;;  %v818_v36 = vrot.slane %v804_v7, %v1778_v35 }
 0x460   : > { %v540_v21 = vsel %vm538_vm0, %v537_v38, 0.0  ;;  %v543_v39 = vadd.f32 %v536_v37, %v530_v20  ;;  %vm1808_vm0 = vcmp.eq.s32.totalorder %v880_v10, 1  ;;  %v863_v20 = vsel %vm855_vm14, 1, %v1638_v1 }
 0x461   : > { %v542_v41 = vadd.f32 %v540_v21, %v529_v24  ;;  %v892_v28 = vrot.slane %v863_v20, %v1714_v18  ;;  %v888_v33 = vrot.slane %v863_v20, %v1711_v17  ;;  %v680_v20 = vpop.permute.xlu1 %679 }
 0x462   : > { %v625_v42 = vpop.permute.xlu0 %624 }
 0x463   : > { %v549_v43 = vadd.f32 %v543_v39, %v542_v41  ;;  %v1464_v44 = vtrunc.f32 %v542_v41 }
 0x465   : > { %v1465_v45 = vcvt.f32.s32 %v1464_v44  ;;  %v1466_v46 = vtrunc.f32 %v549_v43 }
 0x466   : > { %v629_v47 = vpop.permute.xlu0 %628 }
 0x467   : > { %v1467_v9 = vcvt.f32.s32 %v1466_v46  ;;  %v1786_v49 = vadd.s32 4294967295, %v1465_v45 }
 0x469   : > { %v1788_v50 = vadd.s32 4294967295, %v1467_v9 }
 0x46a   : > { %v636_v53 = vpop.permute.xlu0 %635 }
 0x46b   : > { %v569_v51 = vcombine.low %v1786_v49, %v1788_v50  ;;  %v570_v38 = vcombine.high %v1786_v49, %v1788_v50  ;;  %v820_v49 = vcombine.high %v818_v36, %v818_v36 }
 0x46d   : > { %v577_v54 = vrot.slane %v569_v51, %v1778_v35  ;;  %v584_v15 = vrot.slane %v570_v38, %v1778_v35  ;;  %v1878_v58 = vrot.slane %v820_v49, %v1778_v35 }
 0x46e   : > { %v640_v63 = vpop.permute.xlu0 %639 }
 0x46f   : > { %v593_v55 = vrot.slane %v577_v54, %v1778_v35  ;;  %v585_v57 = vcombine.high %v577_v54, %v577_v54  ;;  %v600_v6 = vrot.slane %v584_v15, %v1778_v35  ;;  %v852_v38 = vcombine.high %v1878_v58, %v1878_v58 }
 0x471   : > { %v710_v59 = vrot.slane %v593_v55, %v1711_v17  ;;  %v714_v60 = vrot.slane %v593_v55, %v1714_v18  ;;  %v607_v61 = vrot.slane %v585_v57, %v1778_v35  ;;  %v615_v16 = vcombine.high %v593_v55, %v593_v55 }
 0x472   : > { %v647_v19 = vpop.permute.xlu0 %646  ;;  %v586_v57 = vcombine.high %v584_v15, %v584_v15  ;;  %v746_v3 = vrot.slane %v600_v6, %v1714_v18 }
 0x473   : > { %vm771_vm3 = vcmp.eq.s32.totalorder %v710_v59, %v625_v42  ;;  %vm772_vm4 = vcmp.eq.s32.totalorder %v714_v60, %v625_v42  ;;  %vm773_vm6 = vcmp.eq.s32.totalorder %v710_v59, %v629_v47  ;;  %vm774_vm9 = vcmp.eq.s32.totalorder %v714_v60, %v629_v47 }
 0x474   : > { %vm949_vm8 = vmand %vm771_vm3, %vm933_vm5  ;;  %v718_v5 = vrot.slane %v607_v61, %v1711_v17  ;;  %v722_v8 = vrot.slane %v607_v61, %v1714_v18  ;;  %v730_v30 = vrot.slane %v615_v16, %v1714_v18  ;;  %v726_v26 = vrot.slane %v615_v16, %v1711_v17 }
 0x475   : > { %vm950_vm10 = vmand %vm772_vm4, %vm934_vm7  ;;  %v1378_v11 = vsel %vm949_vm8, 1.0, %v1646_v2  ;;  %v617_v37 = vcombine.high %v607_v61, %v607_v61  ;;  %v1850_v42 = vrot.slane %v818_v36, %v1778_v35  ;;  %v742_v60 = vrot.slane %v600_v6, %v1711_v17 }
 0x476   : > { %v1379_v12 = vsel %vm950_vm10, 1.0, %v1646_v2  ;;  %vm951_vm11 = vmand %vm773_vm6, %vm933_vm5  ;;  %vm775_vm13 = vcmp.eq.s32.totalorder %v718_v5, %v636_v53  ;;  %vm776_vm15 = vcmp.eq.s32.totalorder %v722_v8, %v636_v53  ;;  %vm777_vm4 = vcmp.eq.s32.totalorder %v718_v5, %v640_v63  ;;  %v658_v34 = vpop.permute.xlu0 %657 }
 0x477   : > { %vm952_vm12 = vmand %vm774_vm9, %vm934_vm7  ;;  %v1510_v29 = vpack.i.bf16 %v1378_v11, %v1379_v12  ;;  %v1380_v23 = vsel %vm951_vm11, 1.0, %v1646_v2  ;;  %vm778_vm5 = vcmp.eq.s32.totalorder %v722_v8, %v640_v63  ;;  %vm780_vm8 = vcmp.eq.s32.totalorder %v730_v30, %v647_v19 }
 0x478   : > { %v1381_v24 = vsel %vm952_vm12, 1.0, %v1646_v2  ;;  %vm953_vm1 = vmand %vm775_vm13, %vm1808_vm0  ;;  %vm856_vm9 = vcmp.ne.s32.totalorder %v851_v25, 0  ;;  %vm779_vm10 = vcmp.eq.s32.totalorder %v726_v26, %v647_v19  ;;  %vm1839_vm11 = vcmp.eq.s32.totalorder %v892_v28, 1 }
 0x479   : > { %vm954_vm3 = vmand %vm776_vm15, %vm1814_vm2  ;;  %1511 = vxpose.xlu1.b32.start [1/16] %v1510_v29, 128  ;;  %v1512_v27 = vpack.i.bf16 %v1380_v23, %v1381_v24  ;;  %v1382_v31 = vsel %vm953_vm1, 1.0, %v1646_v2  ;;  %vm937_vm12 = vcmp.eq.s32.totalorder %v888_v33, 1  ;;  %v864_v7 = vsel %vm856_vm9, 1, %v1638_v1 }
 0x47a   : > { %v1383_v32 = vsel %vm954_vm3, 1.0, %v1646_v2  ;;  %vm955_vm6 = vmand %vm777_vm4, %vm1808_vm0  ;;  %vm781_vm14 = vcmp.eq.s32.totalorder %v726_v26, %v651_v40  ;;  %v734_v41 = vrot.slane %v617_v37, %v1711_v17  ;;  %vm782_vm0 = vcmp.eq.s32.totalorder %v730_v30, %v651_v40  ;;  %v662_v44 = vpop.permute.xlu0 %661 }
 0x47b   : > { %vm956_vm7 = vmand %vm778_vm5, %vm1814_vm2  ;;  %v1514_v21 = vpack.i.bf16 %v1382_v31, %v1383_v32  ;;  %v1384_v0 = vsel %vm955_vm6, 1.0, %v1646_v2  ;;  %v738_v43 = vrot.slane %v617_v37, %v1714_v18  ;;  %v896_v46 = vrot.slane %v864_v7, %v1711_v17 }
 0x47c   : > { %v1385_v4 = vsel %vm956_vm7, 1.0, %v1646_v2  ;;  %vm958_vm13 = vmand %vm780_vm8, %vm1839_vm11  ;;  %v900_v48 = vrot.slane %v864_v7, %v1714_v18  ;;  %vm783_vm3 = vcmp.eq.s32.totalorder %v734_v41, %v658_v34  ;;  %vm857_vm4 = vcmp.ne.s32.totalorder %v1850_v42, 0 }
 0x47d   : > { %1513 = vxpose.xlu1.b32.cont [2/16] %v1512_v27, 128  ;;  %vm957_vm15 = vmand %vm779_vm10, %vm937_vm12  ;;  %v1516_v45 = vpack.i.bf16 %v1384_v0, %v1385_v4  ;;  %v1387_v47 = vsel %vm958_vm13, 1.0, %v1646_v2  ;;  %vm784_vm5 = vcmp.eq.s32.totalorder %v738_v43, %v658_v34  ;;  %vm1861_vm6 = vcmp.eq.s32.totalorder %v896_v46, 1  ;;  %v691_v0 = vpop.permute.xlu1 %690 }
 0x47e   : > { %vm959_vm2 = vmand %vm781_vm14, %vm937_vm12  ;;  %v1386_v9 = vsel %vm957_vm15, 1.0, %v1646_v2  ;;  %vm1868_vm7 = vcmp.eq.s32.totalorder %v900_v48, 1  ;;  %v669_v55 = vpop.permute.xlu0 %668  ;;  %v865_v56 = vsel %vm857_vm4, 1, %v1638_v1  ;;  %vm785_vm10 = vcmp.eq.s32.totalorder %v734_v41, %v662_v44 }
 0x47f   : > { %vm960_vm1 = vmand %vm782_vm0, %vm1839_vm11  ;;  %v1518_v50 = vpack.i.bf16 %v1386_v9, %v1387_v47  ;;  %v1388_v52 = vsel %vm959_vm2, 1.0, %v1646_v2  ;;  %vm786_vm11 = vcmp.eq.s32.totalorder %v738_v43, %v662_v44  ;;  %v904_v61 = vrot.slane %v865_v56, %v1711_v17 }
 0x480   : > { %v1389_v53 = vsel %vm960_vm1, 1.0, %v1646_v2  ;;  %vm961_vm8 = vmand %vm783_vm3, %vm1861_vm6  ;;  %v908_v5 = vrot.slane %v865_v56, %v1714_v18  ;;  %vm787_vm14 = vcmp.eq.s32.totalorder %v742_v60, %v669_v55  ;;  %v614_v8 = vrot.slane %v586_v57, %v1778_v35 }
 0x481   : > { %1515 = vxpose.xlu1.b32.cont [3/16] %v1514_v21, 128  ;;  %vm962_vm9 = vmand %vm784_vm5, %vm1868_vm7  ;;  %v1520_v59 = vpack.i.bf16 %v1388_v52, %v1389_v53  ;;  %v1390_v62 = vsel %vm961_vm8, 1.0, %v1646_v2  ;;  %vm858_vm15 = vcmp.ne.s32.totalorder %v1878_v58, 0  ;;  %vm788_vm0 = vcmp.eq.s32.totalorder %v746_v3, %v669_v55  ;;  %v702_v51 = vpop.permute.xlu1 %701 }
 0x482   : > { %v1391_v63 = vsel %vm962_vm9, 1.0, %v1646_v2  ;;  %vm963_vm12 = vmand %vm785_vm10, %vm1861_vm6  ;;  %v673_v10 = vpop.permute.xlu0 %672  ;;  %vm1892_vm2 = vcmp.eq.s32.totalorder %v904_v61, 1  ;;  %vm1898_vm1 = vcmp.eq.s32.totalorder %v908_v5, 1  ;;  %v866_v35 = vsel %vm858_vm15, 1, %v1638_v1 }
 0x483   : > { %vm964_vm13 = vmand %vm786_vm11, %vm1868_vm7  ;;  %v1522_v11 = vpack.i.bf16 %v1390_v62, %v1391_v63  ;;  %v1392_v13 = vsel %vm963_vm12, 1.0, %v1646_v2  ;;  %vm789_vm5 = vcmp.eq.s32.totalorder %v742_v60, %v673_v10  ;;  %v754_v22 = vrot.slane %v614_v8, %v1714_v18  ;;  %v1969_v62 = vld [vmem:[%s295_s12] sm:$0xff] }
 0x484   : > { %v1393_v16 = vsel %vm964_vm13, 1.0, %v1646_v2  ;;  %vm965_vm3 = vmand %vm787_vm14, %vm1892_vm2  ;;  %v850_v29 = vcombine.high %v1850_v42, %v1850_v42  ;;  %vm790_vm6 = vcmp.eq.s32.totalorder %v746_v3, %v673_v10  ;;  %v750_v23 = vrot.slane %v614_v8, %v1711_v17  ;;  %v1971_v63 = vld [vmem:[%s290_s15] sm:$0xff] }
 0x485   : > { %1517 = vxpose.xlu1.b32.cont [4/16] %v1516_v45, 128  ;;  %vm966_vm4 = vmand %vm788_vm0, %vm1898_vm1  ;;  %v1524_v24 = vpack.i.bf16 %v1392_v13, %v1393_v16  ;;  %v916_v14 = vrot.slane %v866_v35, %v1714_v18  ;;  %v1394_v30 = vsel %vm965_vm3, 1.0, %v1646_v2  ;;  %v912_v26 = vrot.slane %v866_v35, %v1711_v17 }
 0x486   : > { %v1395_v25 = vsel %vm966_vm4, 1.0, %v1646_v2  ;;  %vm967_vm7 = vmand %vm789_vm5, %vm1892_vm2  ;;  %vm792_vm9 = vcmp.eq.s32.totalorder %v754_v22, %v680_v20  ;;  %v616_v27 = vcombine.high %v600_v6, %v600_v6  ;;  %vm859_vm10 = vcmp.ne.s32.totalorder %v850_v29, 0  ;;  %v684_v28 = vpop.permute.xlu0 %683 }
 0x487   : > { %vm968_vm8 = vmand %vm790_vm6, %vm1898_vm1  ;;  %vm791_vm11 = vcmp.eq.s32.totalorder %v750_v23, %v680_v20  ;;  %v1526_v31 = vpack.i.bf16 %v1394_v30, %v1395_v25  ;;  %vm1919_vm12 = vcmp.eq.s32.totalorder %v916_v14, 1  ;;  %v1396_v33 = vsel %vm967_vm7, 1.0, %v1646_v2 }
 0x488   : > { %v1397_v34 = vsel %vm968_vm8, 1.0, %v1646_v2  ;;  %vm943_vm13 = vcmp.eq.s32.totalorder %v912_v26, 1  ;;  %vm970_vm14 = vmand %vm792_vm9, %vm1919_vm12  ;;  %v867_v36 = vsel %vm859_vm10, 1, %v1638_v1  ;;  %vm793_vm15 = vcmp.eq.s32.totalorder %v750_v23, %v684_v28 }
 0x489   : > { %1519 = vxpose.xlu1.b32.cont [5/16] %v1518_v50, 128  ;;  %vm969_vm0 = vmand %vm791_vm11, %vm943_vm13  ;;  %v762_v37 = vrot.slane %v616_v27, %v1714_v18  ;;  %vm794_vm2 = vcmp.eq.s32.totalorder %v754_v22, %v684_v28  ;;  %v758_v21 = vrot.slane %v616_v27, %v1711_v17  ;;  %v1528_v39 = vpack.i.bf16 %v1396_v33, %v1397_v34 }
 0x48a   : > { %v924_v40 = vrot.slane %v867_v36, %v1714_v18  ;;  %vm971_vm1 = vmand %vm793_vm15, %vm943_vm13  ;;  %v1399_v4 = vsel %vm970_vm14, 1.0, %v1646_v2  ;;  %v1398_v7 = vsel %vm969_vm0, 1.0, %v1646_v2  ;;  %v920_v41 = vrot.slane %v867_v36, %v1711_v17  ;;  %v695_v43 = vpop.permute.xlu0 %694 }
 0x48b   : > { %vm972_vm3 = vmand %vm794_vm2, %vm1919_vm12  ;;  %vm796_vm4 = vcmp.eq.s32.totalorder %v762_v37, %v691_v0  ;;  %v618_v42 = vcombine.high %v614_v8, %v614_v8  ;;  %vm860_vm5 = vcmp.ne.s32.totalorder %v852_v38, 0  ;;  %vm795_vm6 = vcmp.eq.s32.totalorder %v758_v21, %v691_v0 }
 0x48c   : > { %v1530_v44 = vpack.i.bf16 %v1398_v7, %v1399_v4  ;;  %vm1938_vm7 = vcmp.eq.s32.totalorder %v924_v40, 1  ;;  %v1400_v46 = vsel %vm971_vm1, 1.0, %v1646_v2  ;;  %v1401_v15 = vsel %vm972_vm3, 1.0, %v1646_v2 }
 0x48d   : > { %1521 = vxpose.xlu1.b32.cont [6/16] %v1520_v59, 128  ;;  %vm945_vm8 = vcmp.eq.s32.totalorder %v920_v41, 1  ;;  %vm974_vm9 = vmand %vm796_vm4, %vm1938_vm7  ;;  %v868_v47 = vsel %vm860_vm5, 1, %v1638_v1  ;;  %vm797_vm10 = vcmp.eq.s32.totalorder %v758_v21, %v695_v43  ;;  %v770_v9 = vrot.slane %v618_v42, %v1714_v18 }
 0x48e   : > { %vm973_vm11 = vmand %vm795_vm6, %vm945_vm8  ;;  %vm798_vm12 = vcmp.eq.s32.totalorder %v762_v37, %v695_v43  ;;  %v766_v48 = vrot.slane %v618_v42, %v1711_v17  ;;  %v1532_v49 = vpack.i.bf16 %v1400_v46, %v1401_v15  ;;  %v932_v50 = vrot.slane %v868_v47, %v1714_v18  ;;  %v706_v1 = vpop.permute.xlu0 %705 }
 0x48f   : > { %vm975_vm13 = vmand %vm797_vm10, %vm945_vm8  ;;  %v1403_v6 = vsel %vm974_vm9, 1.0, %v1646_v2  ;;  %v1402_v52 = vsel %vm973_vm11, 1.0, %v1646_v2  ;;  %v928_v53 = vrot.slane %v868_v47, %v1711_v17  ;;  %vm800_vm15 = vcmp.eq.s32.totalorder %v770_v9, %v702_v51 }
 0x490   : > { %vm976_vm14 = vmand %vm798_vm12, %vm1938_vm7  ;;  %vm799_vm0 = vcmp.eq.s32.totalorder %v766_v48, %v702_v51  ;;  %v1534_v54 = vpack.i.bf16 %v1402_v52, %v1403_v6  ;;  %vm948_vm2 = vcmp.eq.s32.totalorder %v932_v50, 1  ;;  %v1404_v55 = vsel %vm975_vm13, 1.0, %v1646_v2 }
 0x491   : > { %1523 = vxpose.xlu1.b32.cont [7/16] %v1522_v11, 128  ;;  %v1405_v18 = vsel %vm976_vm14, 1.0, %v1646_v2  ;;  %vm947_vm1 = vcmp.eq.s32.totalorder %v928_v53, 1  ;;  %vm978_vm3 = vmand %vm800_vm15, %vm948_vm2  ;;  %vm801_vm4 = vcmp.eq.s32.totalorder %v766_v48, %v706_v1  ;;  %vm802_vm6 = vcmp.eq.s32.totalorder %v770_v9, %v706_v1 }
 0x492   : > { %vm977_vm5 = vmand %vm799_vm0, %vm947_vm1  ;;  %v1536_v17 = vpack.i.bf16 %v1404_v55, %v1405_v18  ;;  %v1407_v56 = vsel %vm978_vm3, 1.0, %v1646_v2  ;;  %v1411_v3 = vcombine.high %v1969_v62, %v1969_v62 }
 0x493   : > { %vm979_vm7 = vmand %vm801_vm4, %vm947_vm1  ;;  %v1406_v57 = vsel %vm977_vm5, 1.0, %v1646_v2 }
 0x494   : > { %vm980_vm8 = vmand %vm802_vm6, %vm948_vm2  ;;  %v1538_v58 = vpack.i.bf16 %v1406_v57, %v1407_v56  ;;  %v1408_v59 = vsel %vm979_vm7, 1.0, %v1646_v2  ;;  %1166 = vmatprep.mubr.bf16.mxu0 %v1411_v3 }
 0x495   : > { %1525 = vxpose.xlu1.b32.cont [8/16] %v1524_v24, 128  ;;  %v1409_v60 = vsel %vm980_vm8, 1.0, %v1646_v2  ;;  %v1413_v2 = vcombine.high %v1971_v63, %v1971_v63 }
 0x496   : > { %v1540_v61 = vpack.i.bf16 %v1408_v59, %v1409_v60 }
 0x497   : > { %1213 = vmatprep.mubr.bf16.mxu1 %v1413_v2 }
 0x499   : > { %1527 = vxpose.xlu1.b32.cont [9/16] %v1526_v31, 128 }
 0x49d   : > { %1529 = vxpose.xlu1.b32.cont [10/16] %v1528_v39, 128 }
 0x4a1   : > { %1531 = vxpose.xlu1.b32.cont [11/16] %v1530_v44, 128 }
 0x4a5   : > { %1533 = vxpose.xlu1.b32.cont [12/16] %v1532_v49, 128 }
 0x4a9   : > { %1535 = vxpose.xlu1.b32.cont [13/16] %v1534_v54, 128 }
 0x4ad   : > { %1537 = vxpose.xlu1.b32.cont [14/16] %v1536_v17, 128 }
 0x4b1   : > { %1539 = vxpose.xlu1.b32.cont [15/16] %v1538_v58, 128 }
 0x4b5   : > { %1541 = vxpose.xlu1.b32.end [16/16] %v1540_v61, 128 }
 0x4f9   : > { %v1542_v5 = vpop.trf.xlu1 }
 0x4fa   : > { %v1543_v10 = vunpack.i.l.bf16 %v1542_v5  ;;  %v1546_v11 = vunpack.i.h.bf16 %v1542_v5 }
 0x4fd   : > { %v1547_v8 = vpop.trf.xlu1 }
 0x4fe   : > { %v1548_v12 = vunpack.i.l.bf16 %v1547_v8  ;;  %v1551_v13 = vunpack.i.h.bf16 %v1547_v8 }
 0x500   : > { %v1117_v16 = vpack.c.bf16 %v1548_v12, %v1543_v10  ;;  %v1109_v19 = vpack.c.bf16 %v1551_v13, %v1546_v11  ;;  %v1410_v10 = vcombine.low %v1969_v62, %v1969_v62  ;;  %v1412_v11 = vcombine.low %v1971_v63, %v1971_v63  ;;  %v1221_v63 = vld [vmem:[%s280_s22] sm:$0xff] }
 0x501   : > { %v1552_v35 = vpop.trf.xlu1 }
 0x502   : > { %1420 = vmatprep.subr.bf16.mxu0 %v1117_v16  ;;  %1442 = vmatprep.subr.bf16.mxu1 %v1117_v16  ;;  %v1556_v22 = vunpack.i.h.bf16 %v1552_v35  ;;  %v1553_v29 = vunpack.i.l.bf16 %v1552_v35  ;;  %v1222_v35 = vld [vmem:[%s280_s22 + $0x8] sm:$0x1] }
 0x503   : > { %1421 = vmatpush3.bf16.msra.mxu0 %v1109_v19  ;;  %1443 = vmatpush3.bf16.msra.mxu1 %v1109_v19 }
 0x505   : > { %v1557_v23 = vpop.trf.xlu1 }
 0x506   : > { %v1561_v24 = vunpack.i.h.bf16 %v1557_v23  ;;  %v1558_v14 = vunpack.i.l.bf16 %v1557_v23 }
 0x508   : > { %v1118_v20 = vpack.c.bf16 %v1558_v14, %v1553_v29  ;;  %v1110_v30 = vpack.c.bf16 %v1561_v24, %v1556_v22 }
 0x509   : > { %v1562_v25 = vpop.trf.xlu1 }
 0x50a   : > { %1422 = vmatprep.subr.bf16.mxu0 %v1118_v20  ;;  %1444 = vmatprep.subr.bf16.mxu1 %v1118_v20  ;;  %v1566_v26 = vunpack.i.h.bf16 %v1562_v25  ;;  %v1563_v27 = vunpack.i.l.bf16 %v1562_v25 }
 0x50b   : > { %1423 = vmatpush3.bf16.msra.mxu0 %v1110_v30  ;;  %1445 = vmatpush3.bf16.msra.mxu1 %v1110_v30  ;;  %v1229_v30 = vrot.slane %v1222_v35, 7 }
 0x50d   : > { %v1567_v28 = vpop.trf.xlu1 }
 0x50e   : > { %v1571_v31 = vunpack.i.h.bf16 %v1567_v28  ;;  %v1568_v32 = vunpack.i.l.bf16 %v1567_v28 }
 0x510   : > { %v1119_v33 = vpack.c.bf16 %v1568_v32, %v1563_v27  ;;  %v1111_v34 = vpack.c.bf16 %v1571_v31, %v1566_v26  ;;  %v1225_v26 = vrot.slane %v1221_v63, 7  ;;  %v1236_v27 = vrot.slane %v1221_v63, 6 }
 0x511   : > { %v1572_v36 = vpop.trf.xlu1 }
 0x512   : > { %1424 = vmatprep.subr.bf16.mxu0 %v1119_v33  ;;  %1446 = vmatprep.subr.bf16.mxu1 %v1119_v33  ;;  %v1576_v37 = vunpack.i.h.bf16 %v1572_v36  ;;  %v1573_v38 = vunpack.i.l.bf16 %v1572_v36 }
 0x513   : > { %1425 = vmatpush3.bf16.msra.mxu0 %v1111_v34  ;;  %1447 = vmatpush3.bf16.msra.mxu1 %v1111_v34 }
 0x515   : > { %v1577_v21 = vpop.trf.xlu1 }
 0x516   : > { %v1581_v39 = vunpack.i.h.bf16 %v1577_v21  ;;  %v1578_v40 = vunpack.i.l.bf16 %v1577_v21 }
 0x518   : > { %v1120_v0 = vpack.c.bf16 %v1578_v40, %v1573_v38  ;;  %v1112_v4 = vpack.c.bf16 %v1581_v39, %v1576_v37 }
 0x519   : > { %v1582_v7 = vpop.trf.xlu1 }
 0x51a   : > { %1426 = vmatprep.subr.bf16.mxu0 %v1120_v0  ;;  %1448 = vmatprep.subr.bf16.mxu1 %v1120_v0  ;;  %v1586_v41 = vunpack.i.h.bf16 %v1582_v7  ;;  %v1583_v42 = vunpack.i.l.bf16 %v1582_v7 }
 0x51b   : > { %1427 = vmatpush3.bf16.msra.mxu0 %v1112_v4  ;;  %1449 = vmatpush3.bf16.msra.mxu1 %v1112_v4 }
 0x51d   : > { %v1587_v43 = vpop.trf.xlu1 }
 0x51e   : > { %v1591_v44 = vunpack.i.h.bf16 %v1587_v43  ;;  %v1588_v45 = vunpack.i.l.bf16 %v1587_v43 }
 0x520   : > { %v1121_v46 = vpack.c.bf16 %v1588_v45, %v1583_v42  ;;  %v1113_v15 = vpack.c.bf16 %v1591_v44, %v1586_v41 }
 0x521   : > { %v1592_v47 = vpop.trf.xlu1 }
 0x522   : > { %1428 = vmatprep.subr.bf16.mxu0 %v1121_v46  ;;  %1450 = vmatprep.subr.bf16.mxu1 %v1121_v46  ;;  %v1596_v9 = vunpack.i.h.bf16 %v1592_v47  ;;  %v1593_v48 = vunpack.i.l.bf16 %v1592_v47 }
 0x523   : > { %1429 = vmatpush3.bf16.msra.mxu0 %v1113_v15  ;;  %1451 = vmatpush3.bf16.msra.mxu1 %v1113_v15 }
 0x525   : > { %v1597_v49 = vpop.trf.xlu1 }
 0x526   : > { %v1601_v50 = vunpack.i.h.bf16 %v1597_v49  ;;  %v1598_v51 = vunpack.i.l.bf16 %v1597_v49 }
 0x528   : > { %v1122_v6 = vpack.c.bf16 %v1598_v51, %v1593_v48  ;;  %v1114_v52 = vpack.c.bf16 %v1601_v50, %v1596_v9 }
 0x529   : > { %v1602_v53 = vpop.trf.xlu1 }
 0x52a   : > { %1430 = vmatprep.subr.bf16.mxu0 %v1122_v6  ;;  %1452 = vmatprep.subr.bf16.mxu1 %v1122_v6  ;;  %v1606_v1 = vunpack.i.h.bf16 %v1602_v53  ;;  %v1603_v54 = vunpack.i.l.bf16 %v1602_v53 }
 0x52b   : > { %1431 = vmatpush3.bf16.msra.mxu0 %v1114_v52  ;;  %1453 = vmatpush3.bf16.msra.mxu1 %v1114_v52 }
 0x52d   : > { %v1607_v55 = vpop.trf.xlu1 }
 0x52e   : > { %v1611_v18 = vunpack.i.h.bf16 %v1607_v55  ;;  %v1608_v17 = vunpack.i.l.bf16 %v1607_v55 }
 0x530   : > { %v1123_v56 = vpack.c.bf16 %v1608_v17, %v1603_v54  ;;  %v1115_v57 = vpack.c.bf16 %v1611_v18, %v1606_v1 }
 0x531   : > { %v1612_v58 = vpop.trf.xlu1 }
 0x532   : > { %1432 = vmatprep.subr.bf16.mxu0 %v1123_v56  ;;  %1454 = vmatprep.subr.bf16.mxu1 %v1123_v56  ;;  %v1616_v59 = vunpack.i.h.bf16 %v1612_v58  ;;  %v1613_v60 = vunpack.i.l.bf16 %v1612_v58 }
 0x533   : > { %1433 = vmatpush3.bf16.msra.mxu0 %v1115_v57  ;;  %1455 = vmatpush3.bf16.msra.mxu1 %v1115_v57 }
 0x535   : > { %v1617_v61 = vpop.trf.xlu1 }
 0x536   : > { %v1621_v3 = vunpack.i.h.bf16 %v1617_v61  ;;  %v1618_v2 = vunpack.i.l.bf16 %v1617_v61 }
 0x538   : > { %v1124_v5 = vpack.c.bf16 %v1618_v2, %v1613_v60  ;;  %v1116_v8 = vpack.c.bf16 %v1621_v3, %v1616_v59 }
 0x53a   : > { %1434 = vmatprep.subr.bf16.mxu0 %v1124_v5  ;;  %1456 = vmatprep.subr.bf16.mxu1 %v1124_v5 }
 0x53b   : > { %1435 = vmatpush3.bf16.msra.mxu0 %v1116_v8  ;;  %1457 = vmatpush3.bf16.msra.mxu1 %v1116_v8 }
 0x53e   : > { %1167 = vmatmul.mubr.bf16.vlgmr.msra.gmra.mrb[0].mxu0 %v1410_v10  ;;  %1214 = vmatmul.mubr.bf16.vlgmr.msra.gmra.mrb[0].mxu1 %v1412_v11 }
 0x611   : > { %v1436_v12 = vpop.f32.mrb[0].mxu0  ;;  %v1458_v13 = vpop.f32.mrb[0].mxu1 }
 0x612   : > { %v1437_v16 = vpop.f32.mrb[1].mxu0  ;;  %v1459_v19 = vpop.f32.mrb[1].mxu1 }
 0x613   : > { %v1438_v22 = vadd.f32 %v1437_v16, %v1436_v12  ;;  %v1460_v62 = vadd.f32 %v1459_v19, %v1458_v13  ;;  %v1439_v29 = vpop.f32.mrb[2].mxu0  ;;  %v1461_v23 = vpop.f32.mrb[2].mxu1 }
 0x614   : > { %v1440_v24 = vpop.f32.mrb[3].mxu0  ;;  %v1462_v14 = vpop.f32.mrb[3].mxu1 }
 0x615   : > { %v1216_v20 = vadd.f32 %v1460_v62, %v1438_v22 }
 0x617   : > { %v1223_v25 = vsub.f32 %v1216_v20, %v1221_v63  ;;  %v1253_v28 = vrot.slane %v1216_v20, 5  ;;  %1257 = vst [vmem:[%s299_s25] sm:$0x78] %v1216_v20  ;;  %v1245_v40 = vrot.slane %v1216_v20, 7  ;;  %v1249_v0 = vrot.slane %v1216_v20, 6 }
 0x619   : > { %v1231_v31 = vmul.f32 %v1229_v30, %v1223_v25  ;;  %v1239_v32 = vmul.f32 %v1223_v25, %v1222_v35  ;;  %v1255_v33 = vmul.f32 %v1253_v28, %v1223_v25  ;;  %v1227_v34 = vmul.f32 %v1225_v26, %v1223_v25 }
 0x61a   : > { %v1238_v37 = vmul.f32 %v1236_v27, %v1223_v25 }
 0x61b   : > { %v1233_v36 = vrot.slane %v1231_v31, 1  ;;  %v1241_v38 = vrot.slane %v1239_v32, 7  ;;  %1256 = vst [vmem:[%s299_s25] sm:$0x4] %v1255_v33 }
 0x61d   : > { %v1235_v21 = vadd.f32 %v1233_v36, %v1227_v34  ;;  %v1243_v39 = vsub.f32 %v1238_v37, %v1241_v38 }
 0x61f   : > { %v1247_v4 = vmul.f32 %v1245_v40, %v1235_v21  ;;  %v1251_v7 = vmul.f32 %v1249_v0, %v1243_v39 }
 0x621   : > { %1248 = vst [vmem:[%s299_s25] sm:$0x1] %v1247_v4  ;;  %1252 = vst [vmem:[%s299_s25] sm:$0x2] %v1251_v7 }
 0x622 PF: > { %s15_s18 = sadd.s32 1, %s1635_s18  }
 0x623   : > { %p12_p4 = scmp.ge.s32.totalorder %s15_s18, 4  }
 0x625   :  { %14 = sbr.rel (!%p12_p4) target bundleno = 1 (0x1), region = 82 }

</bundles_post_ra>
